<compile_context>
chip_gen: v7x
topology: tpu7x:2x2x1
jax: 0.10.0
libtpu: 0.0.40
codegen_flags: <defaults>
</compile_context>

<pallas_src>
import functools

import jax
import jax.numpy as jnp
from jax.experimental import pallas as pl
from jax.experimental.pallas import tpu as pltpu

HIDDEN_DIM = 256


def _round_up(v, m):
    return ((v + m - 1) // m) * m


def _pick_tm(batch):
    """Batch-tile heuristic.

    Tiny batches -> a single sublane-aligned tile (no wasted padded rows).
    Large batches -> big tiles (amortize ~0.35us/grid-step, bigger DMAs, more
    LHS rows per resident RHS through the MXU), but never fewer than 2 grid
    steps so the "parallel" axis can shard across the two v7x TensorCores.
    """
    if batch <= 256:
        return _round_up(max(batch, 8), 8)
    tm = 512
    while tm > 128 and pl.cdiv(batch, tm) < 2:
        tm //= 2
    return tm


def _resident_spec(shape):
    """Constant index_map => block stays resident in VMEM across grid steps.

    Single-buffer it (it is never re-fetched, so the second pipeline buffer is
    pure VMEM waste).  Fall back silently if this JAX build does not support
    the pipeline_mode kwarg / Buffered(1).
    """
    try:
        return pl.BlockSpec(shape, lambda i: (0, 0), pipeline_mode=pl.Buffered(1))
    except Exception:  # pragma: no cover - older JAX without pipeline_mode
        return pl.BlockSpec(shape, lambda i: (0, 0))


def mlp_readout_kernel(x_ref, w1_ref, b1_ref, w2_ref, b2_ref, o_ref):
    # fc1: (tm, K) @ (K, H) on the MXU with f32 accumulation.
    h = jnp.dot(x_ref[...], w1_ref[...], preferred_element_type=jnp.float32)
    # Bias + ReLU in f32 on the VPU, then a single cast to the fc2 compute
    # dtype (bf16 when bf16 params are passed).  No scratch round-trip.
    h = jnp.maximum(h + b1_ref[...].astype(jnp.float32), 0.0)
    h = h.astype(w2_ref.dtype)
    # fc2: (tm, H) @ (H, N) + (1, N), f32 accumulation.
    y = jnp.dot(h, w2_ref[...], preferred_element_type=jnp.float32)
    o_ref[...] = (y + b2_ref[...].astype(jnp.float32)).astype(o_ref.dtype)


def prepare_params(w1, b1, w2, b2, dtype=jnp.float32):
    """One-time parameter prep (do this at setup, NOT per forward call).

    * Weights stored (in_features, out_features) == PyTorch weight.T.
    * Hidden dim padded to a lane multiple (no-op for HIDDEN_DIM=256); the
      zero-padded hidden columns contribute exactly 0 to fc2.
    * input_dim / output_dim are intentionally left UNPADDED.
    * dtype=jnp.bfloat16 gives the bf16-MXU / half-DMA path on v5e/v6e/v7x
      (f32 accumulation is kept inside the kernel).
    """
    in_dim, hidden = w1.shape
    out_dim = w2.shape[1]
    H = _round_up(hidden, 128)
    w1p = jnp.pad(w1, ((0, 0), (0, H - hidden))).astype(dtype)
    b1p = jnp.pad(b1.reshape(1, -1), ((0, 0), (0, H - hidden))).astype(dtype)
    w2p = jnp.pad(w2, ((0, H - hidden), (0, 0))).astype(dtype)
    b2p = b2.reshape(1, -1).astype(dtype)
    return w1p, b1p, w2p, b2p


@functools.partial(jax.jit, static_argnames=("tm",))
def mlp_readout(x, w1, b1, w2, b2, tm=None):
    """x: (B, input_dim).  Params must come from prepare_params().
    Returns (B, output_dim) in the params' dtype."""
    B, in_dim = x.shape
    K, H = w1.shape
    N = w2.shape[1]
    assert in_dim == K, (in_dim, K)

    if tm is None:
        tm = _pick_tm(B)
    Bp = _round_up(B, tm)

    x = x.astype(w1.dtype)
    if Bp != B:
        # Ragged batch -> whole tiles; padded rows sliced off below.
        x = jnp.pad(x, ((0, Bp - B), (0, 0)))

    out = pl.pallas_call(
        mlp_readout_kernel,
        out_shape=jax.ShapeDtypeStruct((Bp, N), x.dtype),
        grid_spec=pltpu.PrefetchScalarGridSpec(
            num_scalar_prefetch=0,
            grid=(Bp // tm,),
            in_specs=[
                pl.BlockSpec((tm, K), lambda i: (i, 0)),  # x tile (pipelined)
                _resident_spec((K, H)),                   # w1 (resident)
                _resident_spec((1, H)),                   # b1 (resident)
                _resident_spec((H, N)),                   # w2 (resident)
                _resident_spec((1, N)),                   # b2 (resident)
            ],
            out_specs=pl.BlockSpec((tm, N), lambda i: (i, 0)),
        ),
        compiler_params=pltpu.CompilerParams(
            dimension_semantics=("parallel",),
            # Actual need is ~1 MiB at these dims; 16 MiB leaves ample headroom
            # and stays well under v7x's 64 MiB per-TC VMEM.
            vmem_limit_bytes=16 * 1024 * 1024,
        ),
    )(x, w1, b1, w2, b2)

    return out[:B, :]


def init_linear_params(key, fan_in, fan_out, dtype=jnp.float32):
    # Mirror PyTorch nn.Linear default init: U(-1/sqrt(fan_in), 1/sqrt(fan_in)),
    # but stored transposed: (fan_in, fan_out).
    kw, kb = jax.random.split(key)
    bound = 1.0 / (fan_in ** 0.5)
    w = jax.random.uniform(kw, (fan_in, fan_out), dtype, -bound, bound)
    b = jax.random.uniform(kb, (1, fan_out), dtype, -bound, bound)
    return w, b


if __name__ == "__main__":
    key = jax.random.PRNGKey(0)
    k_x, k_x2, k_fc1, k_fc2 = jax.random.split(key, 4)

    input_dim, output_dim = 32, 10

    w1, b1 = init_linear_params(k_fc1, input_dim, HIDDEN_DIM)
    w2, b2 = init_linear_params(k_fc2, HIDDEN_DIM, output_dim)

    def ref_fwd(x):  # pure-JAX reference == PyTorch forward
        return jnp.maximum(x @ w1 + b1, 0.0) @ w2 + b2

    # --- f32 path: matches the PyTorch module at tight tolerance -----------
    params_f32 = prepare_params(w1, b1, w2, b2, jnp.float32)

    x_small = jax.random.normal(k_x, (16, input_dim), jnp.float32)
    out_small = jax.block_until_ready(mlp_readout(x_small, *params_f32))
    assert out_small.shape == (16, output_dim)
    assert jnp.allclose(out_small, ref_fwd(x_small), atol=1e-5, rtol=1e-5)

    # Ragged, multi-tile batch (exercises tm=256 with a 2-step "parallel" grid).
    x_big = jax.random.normal(k_x2, (300, input_dim), jnp.float32)
    out_big = jax.block_until_ready(mlp_readout(x_big, *params_f32))
    assert out_big.shape == (300, output_dim)
    assert jnp.allclose(out_big, ref_fwd(x_big), atol=2e-5, rtol=2e-5)

    # --- bf16 weights/activations with f32 accumulation (v6e/v7x MXU path) --
    # NOTE: activations are downcast to bf16 before fc2; results differ from
    # the f32 PyTorch reference beyond ~1e-3 (intended speed/accuracy trade).
    params_bf16 = prepare_params(w1, b1, w2, b2, jnp.bfloat16)
    out_bf16 = jax.block_until_ready(mlp_readout(x_small, *params_bf16))
    assert out_bf16.shape == (16, output_dim)
    assert jnp.allclose(out_bf16.astype(jnp.float32), ref_fwd(x_small),
                        atol=5e-2, rtol=5e-2)

    print("KERNEL_OK")
</pallas_src>

<mosaic_0001>
module attributes {stable_mosaic.version = 11 : i64} {
  func.func @mlp_readout_kernel(%arg0: i32, %arg1: memref<16x32xf32, #tpu.memory_space<vmem>>, %arg2: memref<32x256xf32, #tpu.memory_space<vmem>>, %arg3: memref<1x256xf32, #tpu.memory_space<vmem>>, %arg4: memref<256x10xf32, #tpu.memory_space<vmem>>, %arg5: memref<1x10xf32, #tpu.memory_space<vmem>>, %arg6: memref<16x10xf32, #tpu.memory_space<vmem>>) attributes {dimension_semantics = [#tpu.dimension_semantics<parallel>], iteration_bounds = array<i64: 1>, scalar_prefetch = 0 : i64, scratch_operands = 0 : i64, tpu.core_type = #tpu.core_type<tc>, window_params = [{transform_indices = @transform_0, window_bounds = array<i64: 16, 32>}, {pipeline_mode = #tpu.pipeline_mode<synchronous>, transform_indices = @transform_1, window_bounds = array<i64: 32, 256>}, {pipeline_mode = #tpu.pipeline_mode<synchronous>, transform_indices = @transform_2, window_bounds = array<i64: 1, 256>}, {pipeline_mode = #tpu.pipeline_mode<synchronous>, transform_indices = @transform_3, window_bounds = array<i64: 256, 10>}, {pipeline_mode = #tpu.pipeline_mode<synchronous>, transform_indices = @transform_4, window_bounds = array<i64: 1, 10>}, {transform_indices = @transform_5, window_bounds = array<i64: 16, 10>}]} {
    %c0 = arith.constant 0 : index
    %c0_0 = arith.constant 0 : index
    %0 = vector.load %arg1[%c0, %c0_0] : memref<16x32xf32, #tpu.memory_space<vmem>>, vector<16x32xf32>
    %c0_1 = arith.constant 0 : index
    %c0_2 = arith.constant 0 : index
    %1 = vector.load %arg2[%c0_1, %c0_2] : memref<32x256xf32, #tpu.memory_space<vmem>>, vector<32x256xf32>
    %cst = arith.constant dense<0.000000e+00> : vector<16x256xf32>
    %2 = tpu.matmul %0, %1, %cst {dimension_numbers = #tpu.dot_dimension_numbers<[1], [0], [0], [1], [0, 0, 1, 1], [], []>} : vector<16x32xf32>, vector<32x256xf32>, vector<16x256xf32> -> vector<16x256xf32>
    %c0_3 = arith.constant 0 : index
    %c0_4 = arith.constant 0 : index
    %3 = vector.load %arg3[%c0_3, %c0_4] : memref<1x256xf32, #tpu.memory_space<vmem>>, vector<1x256xf32>
    %4 = vector.broadcast %3 : vector<1x256xf32> to vector<16x256xf32>
    %5 = arith.addf %2, %4 : vector<16x256xf32>
    %cst_5 = arith.constant 0.000000e+00 : f32
    %6 = vector.broadcast %cst_5 : f32 to vector<16x256xf32>
    %7 = arith.maximumf %5, %6 : vector<16x256xf32>
    %c0_6 = arith.constant 0 : index
    %c0_7 = arith.constant 0 : index
    %8 = vector.load %arg4[%c0_6, %c0_7] : memref<256x10xf32, #tpu.memory_space<vmem>>, vector<256x10xf32>
    %cst_8 = arith.constant dense<0.000000e+00> : vector<16x10xf32>
    %9 = tpu.matmul %7, %8, %cst_8 {dimension_numbers = #tpu.dot_dimension_numbers<[1], [0], [0], [1], [0, 0, 1, 1], [], []>} : vector<16x256xf32>, vector<256x10xf32>, vector<16x10xf32> -> vector<16x10xf32>
    %c0_9 = arith.constant 0 : index
    %c0_10 = arith.constant 0 : index
    %10 = vector.load %arg5[%c0_9, %c0_10] : memref<1x10xf32, #tpu.memory_space<vmem>>, vector<1x10xf32>
    %11 = vector.broadcast %10 : vector<1x10xf32> to vector<16x10xf32>
    %12 = arith.addf %9, %11 : vector<16x10xf32>
    %c0_11 = arith.constant 0 : index
    %c0_12 = arith.constant 0 : index
    %13 = vector.load %arg6[%c0_11, %c0_12] : memref<16x10xf32, #tpu.memory_space<vmem>>, vector<16x10xf32>
    tpu.vector_store %arg6[%c0_11, %c0_12], %12 {strides = array<i32>} : memref<16x10xf32, #tpu.memory_space<vmem>>, vector<16x10xf32>,
    return
  }
  func.func @transform_0(%arg0: i32) -> (i32, i32) {
    %c0_i32 = arith.constant 0 : i32
    %c0_i32_0 = arith.constant 0 : i32
    return %arg0, %c0_i32 : i32, i32
  }
  func.func @transform_1(%arg0: i32) -> (i32, i32) {
    %c0_i32 = arith.constant 0 : i32
    %c0_i32_0 = arith.constant 0 : i32
    %c0_i32_1 = arith.constant 0 : i32
    return %c0_i32, %c0_i32_0 : i32, i32
  }
  func.func @transform_2(%arg0: i32) -> (i32, i32) {
    %c0_i32 = arith.constant 0 : i32
    %c0_i32_0 = arith.constant 0 : i32
    %c0_i32_1 = arith.constant 0 : i32
    return %c0_i32, %c0_i32_0 : i32, i32
  }
  func.func @transform_3(%arg0: i32) -> (i32, i32) {
    %c0_i32 = arith.constant 0 : i32
    %c0_i32_0 = arith.constant 0 : i32
    %c0_i32_1 = arith.constant 0 : i32
    return %c0_i32, %c0_i32_0 : i32, i32
  }
  func.func @transform_4(%arg0: i32) -> (i32, i32) {
    %c0_i32 = arith.constant 0 : i32
    %c0_i32_0 = arith.constant 0 : i32
    %c0_i32_1 = arith.constant 0 : i32
    return %c0_i32, %c0_i32_0 : i32, i32
  }
  func.func @transform_5(%arg0: i32) -> (i32, i32) {
    %c0_i32 = arith.constant 0 : i32
    %c0_i32_0 = arith.constant 0 : i32
    return %arg0, %c0_i32 : i32, i32
  }
}

</mosaic_0001>

<bundles_post_ra>
// kernel: mlp_readout.1
= control target key start
LH: loop header
LB: loop body
LE: loop exit
PB: predicated region body
PF: predicated region fallthrough
CT: control target
= control target key end

     0   :  { %v373_v7 = vmov 0.0   ;;  %vm43_vm0 = vcmask 261120   ;;  %s553_s0 = inlined_call_operand.vmem [shape: f32[16,32], index: 0, kind: input, shape index: {}]   ;;  %s554_s1 = inlined_call_operand.vmem [shape: f32[32,256], index: 1, kind: input, shape index: {}]   ;;  %s555_s2 = inlined_call_operand.vmem [shape: f32[1,256], index: 2, kind: input, shape index: {}]   ;;  %s556_s3 = inlined_call_operand.vmem [shape: f32[256,10], index: 3, kind: input, shape index: {}]   ;;  %s557_s4 = inlined_call_operand.vmem [shape: f32[1,10], index: 4, kind: input, shape index: {}]   ;;  %s558_s5 = inlined_call_operand.hbm [shape: f32[16,10], index: 5, kind: output, shape index: {}]  }
   0x1   :  { %v24_v0 = vld [vmem:[%s554_s1 + $0x8] sm:$0xff]  ;;  %v26_v1 = vld [vmem:[%s554_s1 + $0x18] sm:$0xff]  ;;  %v23_v2 = vld [vmem:[%s554_s1] sm:$0xff]  ;;  %114 = vmatprep.mubr.f32.mxu0 %v373_v7 }
   0x2   :  { %v305_v3 = vpack.c.bf16 %v26_v1, %v24_v0  ;;  %v25_v4 = vld [vmem:[%s554_s1 + $0x10] sm:$0xff]  ;;  %v28_v5 = vld [vmem:[%s554_s1 + $0x28] sm:$0xff]  ;;  %v30_v6 = vld [vmem:[%s554_s1 + $0x38] sm:$0xff] }
   0x3   :  { %v307_v8 = vpack.c.bf16 %v25_v4, %v23_v2  ;;  %v309_v9 = vpack.c.bf16 %v30_v6, %v28_v5  ;;  %v27_v10 = vld [vmem:[%s554_s1 + $0x20] sm:$0xff]  ;;  %v29_v11 = vld [vmem:[%s554_s1 + $0x30] sm:$0xff]  ;;  %v148_v13 = vld [vmem:[%s556_s3 + $0x88] sm:$0xff] }
   0x4   :  { %306 = vmatprep.subr.bf16.mxu0 %v305_v3  ;;  %v147_v12 = vld [vmem:[%s556_s3 + $0x80] sm:$0xff]  ;;  %v311_v14 = vpack.c.bf16 %v29_v11, %v27_v10  ;;  %v132_v17 = vld [vmem:[%s556_s3 + $0x8] sm:$0xff]  ;;  %v149_v18 = vld [vmem:[%s556_s3 + $0x90] sm:$0xff] }
   0x5   :  { %308 = vmatpush1.bf16.msra.mxu0 %v307_v8  ;;  %v313_v15 = vpack.c.bf16 %v148_v13, %v147_v12  ;;  %v131_v16 = vld [vmem:[%s556_s3] sm:$0xff]  ;;  %v150_v20 = vld [vmem:[%s556_s3 + $0x98] sm:$0xff]  ;;  %v133_v21 = vld [vmem:[%s556_s3 + $0x10] sm:$0xff] }
   0x6   :  { %310 = vmatprep.subr.bf16.mxu0 %v309_v9  ;;  %v315_v19 = vpack.c.bf16 %v132_v17, %v131_v16  ;;  %v134_v22 = vld [vmem:[%s556_s3 + $0x18] sm:$0xff]  ;;  %v317_v23 = vpack.c.bf16 %v150_v20, %v149_v18  ;;  %v151_v24 = vld [vmem:[%s556_s3 + $0xa0] sm:$0xff]  ;;  %v152_v25 = vld [vmem:[%s556_s3 + $0xa8] sm:$0xff] }
   0x7   :  { %314 = vmatprep.subr.bf16.mxu1 %v313_v15  ;;  %v319_v26 = vpack.c.bf16 %v134_v22, %v133_v21  ;;  %v21_v27 = vld [vmem:[%s553_s0] sm:$0xff]  ;;  %v321_v28 = vpack.c.bf16 %v152_v25, %v151_v24  ;;  %v136_v30 = vld [vmem:[%s556_s3 + $0x28] sm:$0xff]  ;;  %v153_v31 = vld [vmem:[%s556_s3 + $0xb0] sm:$0xff] }
   0x8   :  { %316 = vmatpush3.bf16.msra.mxu1 %v315_v19  ;;  %v135_v29 = vld [vmem:[%s556_s3 + $0x20] sm:$0xff]  ;;  %v154_v32 = vld [vmem:[%s556_s3 + $0xb8] sm:$0xff]  ;;  %v22_v33 = vld [vmem:[%s553_s0 + $0x8] sm:$0xff] }
   0x9   :  { %312 = vmatpush1.bf16.msra.mxu0 %v311_v14  ;;  %318 = vmatprep.subr.bf16.mxu1 %v317_v23  ;;  %v323_v34 = vpack.c.bf16 %v136_v30, %v135_v29  ;;  %v325_v35 = vpack.c.bf16 %v154_v32, %v153_v31  ;;  %v137_v36 = vld [vmem:[%s556_s3 + $0x30] sm:$0xff]  ;;  %v138_v37 = vld [vmem:[%s556_s3 + $0x38] sm:$0xff] }
   0xc   :  { %264 = vmatmul.mubr.msk.f32.vlgmr.msra.gmra.mrb[0].mxu0 %vm43_vm0, %v21_v27  ;;  %320 = vmatpush3.bf16.msra.mxu1 %v319_v26 }
   0xd   :  { %120 = vmatprep.mubr.f32.mxu0 %v373_v7  ;;  %322 = vmatprep.subr.bf16.mxu1 %v321_v28 }
   0xe   :  { %10 = vsyncpa [#allocation3], 0  ;;  %v155_v38 = vld [vmem:[%s556_s3 + $0xc0] sm:$0xff]  ;;  %v156_v39 = vld [vmem:[%s556_s3 + $0xc8] sm:$0xff]  ;;  %v327_v40 = vpack.c.bf16 %v138_v37, %v137_v36  ;;  %v33_v63 = vlaneseq  ;;  %vm245_vm1 = vcmask 80896   ;;  %s374_s24 = smov [#allocation2]  }
   0xf   :  { %v329_v41 = vpack.c.bf16 %v156_v39, %v155_v38  ;;  %v139_v42 = vld [vmem:[%s556_s3 + $0x40] sm:$0xff]  ;;  %v140_v43 = vld [vmem:[%s556_s3 + $0x48] sm:$0xff]  ;;  %v157_v44 = vld [vmem:[%s556_s3 + $0xd0] sm:$0xff]  ;;  %s253_s25 = sshll.u32 %s374_s24, 4  ;;  %s254_s25 = int_to_ptr.vmem [resolvable:$true] %s253_s25 }
  0x10   :  { %265 = vmatmul.mubr.msk.f32.gmra.mrb[2].mxu0 %vm43_vm0, %v22_v33  ;;  %324 = vmatpush3.bf16.msra.mxu1 %v323_v34  ;;  %v158_v45 = vld [vmem:[%s556_s3 + $0xd8] sm:$0xff]  ;;  %v331_v46 = vpack.c.bf16 %v140_v43, %v139_v42  ;;  %v141_v48 = vld [vmem:[%s556_s3 + $0x50] sm:$0xff]  ;;  %v159_v50 = vld [vmem:[%s556_s3 + $0xe0] sm:$0xff]  ;;  %v34_v0 = vshrl.u32 %v33_v63, 7  ;;  %s349_s26 = scalar_lea.vmem %s254_s25, 256  ;;  %p354_p1 = scmp.lt.s32.totalorder %s254_s25, %s254_s25 }
  0x11   :  { %326 = vmatprep.subr.bf16.mxu1 %v325_v35  ;;  %v333_v47 = vpack.c.bf16 %v158_v45, %v157_v44  ;;  %v142_v49 = vld [vmem:[%s556_s3 + $0x58] sm:$0xff]  ;;  %v160_v51 = vld [vmem:[%s556_s3 + $0xe8] sm:$0xff]  ;;  %v143_v54 = vld [vmem:[%s556_s3 + $0x60] sm:$0xff]  ;;  %p350_p0 = scmp.ne.s32.totalorder %s254_s25, %s349_s26  ;;  %p355_p2 = scmp.lt.s32.totalorder %s349_s26, %s349_s26 }
  0x12   :  { %v335_v52 = vpack.c.bf16 %v142_v49, %v141_v48  ;;  %v337_v53 = vpack.c.bf16 %v160_v51, %v159_v50  ;;  %v144_v55 = vld [vmem:[%s556_s3 + $0x68] sm:$0xff]  ;;  %v161_v57 = vld [vmem:[%s556_s3 + $0xf0] sm:$0xff]  ;;  %v162_v58 = vld [vmem:[%s556_s3 + $0xf8] sm:$0xff]  ;;  %v35_v1 = vsub.s32 0, %v34_v0  ;;  %v39_v3 = vsub.s32 1, %v34_v0 }
  0x13   :  { %v339_v56 = vpack.c.bf16 %v144_v55, %v143_v54  ;;  %v341_v59 = vpack.c.bf16 %v162_v58, %v161_v57  ;;  %v145_v60 = vld [vmem:[%s556_s3 + $0x70] sm:$0xff]  ;;  %v146_v61 = vld [vmem:[%s556_s3 + $0x78] sm:$0xff]  ;;  %v31_v2 = vld [vmem:[%s555_s2] sm:$0x3]  ;;  %p356_p3 = por %p355_p2, %p354_p1 }
  0x14   :  { %328 = vmatpush3.bf16.msra.mxu1 %v327_v40  ;;  %v343_v62 = vpack.c.bf16 %v146_v61, %v145_v60  ;;  %v36_v4 = vrot.slane %v31_v2, %v35_v1  ;;  %v40_v5 = vrot.slane %v31_v2, %v39_v3  ;;  %v266_v19 = vld [vmem:[%s557_s4] ss:$0 sm:$0xff] }
  0x15   :  { %330 = vmatprep.subr.bf16.mxu1 %v329_v41  ;;  %p357_p4 = pnand %p356_p3, %p350_p0 }
  0x18   :  { %332 = vmatpush3.bf16.msra.mxu1 %v331_v46 }
  0x19   :  { %334 = vmatprep.subr.bf16.mxu1 %v333_v47 }
  0x1c   :  { %336 = vmatpush3.bf16.msra.mxu1 %v335_v52 }
  0x1d   :  { %338 = vmatprep.subr.bf16.mxu1 %v337_v53 }
  0x20   :  { %340 = vmatpush3.bf16.msra.mxu1 %v339_v56 }
  0x21   :  { %342 = vmatprep.subr.bf16.mxu1 %v341_v59 }
  0x24   :  { %344 = vmatpush3.bf16.msra.mxu1 %v343_v62 }
  0xdf   :  { %v116_v6 = vpop.f32.mrb[0].mxu0 }
  0xe0   :  { %v117_v7 = vadd.f32 %v116_v6, %v36_v4  ;;  %v118_v8 = vpop.f32.mrb[1].mxu0 }
  0xe1   :  { %v119_v9 = vadd.f32 %v118_v8, %v40_v5 }
  0xe2   :  { %v127_v12 = vmax.f32 %v117_v7, 0.0 }
  0xe3   :  { %v122_v10 = vpop.f32.mrb[2].mxu0  ;;  %v128_v11 = vmax.f32 %v119_v9, 0.0 }
  0xe4   :  { %v123_v13 = vadd.f32 %v122_v10, %v36_v4  ;;  %v124_v14 = vpop.f32.mrb[3].mxu0 }
  0xe5   :  { %v125_v15 = vadd.f32 %v124_v14, %v40_v5  ;;  %234 = vmatprep.mubr.f32.mxu1 %v128_v11 }
  0xe6   :  { %235 = vmatmul.mubr.f32.vlgmr.msra.gmra.mrb[0].mxu1 %v127_v12  ;;  %v129_v17 = vmax.f32 %v123_v13, 0.0 }
  0xe7   :  { %v130_v16 = vmax.f32 %v125_v15, 0.0 }
  0xe9   :  { %239 = vmatprep.mubr.f32.mxu1 %v130_v16 }
  0xea   :  { %240 = vmatmul.mubr.f32.gmra.mrb[2].mxu1 %v129_v17 }
 0x1b9   :  { %v299_v18 = vpop.f32.mrb[0].mxu1 }
 0x1ba   :  { %v300_v20 = vpop.f32.mrb[1].mxu1 }
 0x1bb   :  { %v301_v21 = vadd.f32 %v300_v20, %v299_v18 }
 0x1bd   :  { %v237_v22 = vadd.f32 %v301_v21, %v266_v19  ;;  %v302_v23 = vpop.f32.mrb[2].mxu1 }
 0x1be   :  { %v303_v24 = vpop.f32.mrb[3].mxu1 }
 0x1bf   :  { %246 = vst.msk [vmem:[#allocation2] sm:$0xff] %vm245_vm1, %v237_v22  ;;  %v304_v25 = vadd.f32 %v303_v24, %v302_v23 }
 0x1c1   :  { %v242_v26 = vadd.f32 %v304_v25, %v266_v19 }
 0x1c3   :  { %247 = vst.msk [vmem:[#allocation2 + $0x8] sm:$0xff] %vm245_vm1, %v242_v26 }
 0x1c4   :  { %360 = shalt.err (!%p357_p4)
}
 0x1c5   :  { %s361_s28 = scalar_lea.hbm %s558_s5, 256 }
 0x1c6   :  { %p362_p5 = scmp.ne.s32.totalorder %s558_s5, %s361_s28  ;;  %p365_p6 = scmp.lt.u32.totalorder %s361_s28, %s558_s5 }
 0x1c8   :  { %p367_p7 = pnand %p365_p6, %p362_p5 }
 0x1ca   :  { %370 = shalt.err (!%p367_p7)
}
 0x1cb   :  { %s375_s8 = smov 128   ;;  %s376_s9 = smov 8  }
 0x1cc   :  { %259 = dma.vmem_to_hbm [thread:$0]  %s254_s25, 256, %s558_s5, [#allocation3], %s375_s8, %s375_s8, %s376_s9  }
 0x1cd   :  { %371 = dma.done.wait [#allocation3], 256  }
 0x1ce   :  { %372 = vsyncadd [#allocation3], 4294967040 }
 0x1cf   :  { %263 = vsyncpa [#allocation3], 1 }

</bundles_post_ra>
